<compile_context>
chip_gen: v6e
topology: v6e:2x2x1
jax: 0.10.0
libtpu: 0.0.40
codegen_flags: <defaults>
</compile_context>

<pallas_src>
import functools

import jax
import jax.numpy as jnp
import numpy as np
from jax import lax
from jax.experimental import pallas as pl
from jax.experimental.pallas import tpu as pltpu

KH = KW = 4
STRIDE = 2
PAD = 1
BN_EPS = 1e-5
LRELU_SLOPE = 0.2

LANE = 128
SUBLANE = 8
VMEM_LIMIT_BYTES = 48 * 1024 * 1024          # explicit scoped-VMEM cap (< v7x 64 MiB physical)
VMEM_TILE_BUDGET_BYTES = 24 * 1024 * 1024    # working-set budget used to pick the M tile


def _round_up(v, m):
    return ((v + m - 1) // m) * m


def _choose_tile_m(m, kp, cp, in_itemsize):
    """Largest M-tile whose (pass-1 + pass-2) working set fits the VMEM budget."""
    m8 = _round_up(m, SUBLANE)
    for tm in (2048, 1024, 512, 256, 128, 64, 32, 16, 8):
        need = (2 * tm * kp * in_itemsize      # double-buffered patch stream (pass 1)
                + 4 * tm * cp * 4              # double-buffered f32 y in + out streams
                + kp * cp * in_itemsize        # resident weight block
                + 8 * cp * 4)                  # stats / per-channel vectors + slack
        if need <= VMEM_TILE_BUDGET_BYTES:
            return min(tm, m8)
    return SUBLANE


# ----------------------------------------------------------------------------- kernels

def _conv_stats_kernel(p_ref, w_ref, y_ref, stats_ref):
    """Pass 1: conv-as-matmul for one M tile + per-channel partial sum / sum-of-squares.

    p_ref:     (tm, Kp)   im2col patch tile (matmul dtype)
    w_ref:     (Kp, Cp)   conv weight (resident, matmul dtype)
    y_ref:     (tm, Cp)   f32 pre-BN conv output tile
    stats_ref: (2,  Cp)   f32 per-tile partial stats: row 0 = sum, row 1 = sum of squares
    """
    y = jnp.dot(p_ref[...], w_ref[...], preferred_element_type=jnp.float32)
    y_ref[...] = y
    stats_ref[0:1, :] = jnp.sum(y, axis=0, keepdims=True)
    stats_ref[1:2, :] = jnp.sum(y * y, axis=0, keepdims=True)


def _bn_act_kernel(y_ref, stats_ref, g_ref, b_ref, o_ref, *, inv_m, apply_act):
    """Pass 2: normalize with batch stats (+ optional LeakyReLU), in place (f32)."""
    stats = stats_ref[...]
    mean = stats[0:1, :] * inv_m
    var = jnp.maximum(stats[1:2, :] * inv_m - mean * mean, 0.0)
    scale = g_ref[...] * lax.rsqrt(var + BN_EPS)      # rsqrt -> EUP slot
    shift = b_ref[...] - mean * scale
    y = y_ref[...] * scale + shift
    if apply_act:
        y = jnp.where(y >= 0, y, LRELU_SLOPE * y)
    o_ref[...] = y


def _conv_bias_act_kernel(p_ref, w_ref, b_ref, o_ref, *, apply_act):
    """Single-pass path for batch_norm=False: matmul + conv bias (+ LeakyReLU)."""
    y = jnp.dot(p_ref[...], w_ref[...], preferred_element_type=jnp.float32)
    y = y + b_ref[...]
    if apply_act:
        y = jnp.where(y >= 0, y, LRELU_SLOPE * y)
    o_ref[...] = y


# ----------------------------------------------------------------------------- wrapper

def _im2col(x_nchw):
    """x: (N, Cin, H, W) -> patches (N*Ho*Wo, Cin*KH*KW), plus (Ho, Wo).

    TODO(synk): internalize the patch gather (space-to-depth + in-kernel shifted
    reads / manual DMA from an NHWC input) to remove the 4x im2col HBM blow-up and
    the wrapper-side transposes; kept wrapper-side in this revision for robustness.
    """
    n, cin, h, w = x_nchw.shape
    ho = (h + 2 * PAD - KH) // STRIDE + 1
    wo = (w + 2 * PAD - KW) // STRIDE + 1
    x_pad = jnp.pad(x_nchw, ((0, 0), (0, 0), (PAD, PAD), (PAD, PAD)))
    rows = []
    for kh in range(KH):
        cols = []
        for kw in range(KW):
            cols.append(
                x_pad[:, :, kh:kh + STRIDE * ho:STRIDE, kw:kw + STRIDE * wo:STRIDE]
            )  # (N, Cin, Ho, Wo)
        rows.append(jnp.stack(cols, axis=2))  # (N, Cin, KW, Ho, Wo)
    pats = jnp.stack(rows, axis=2)  # (N, Cin, KH, KW, Ho, Wo)
    # -> (N, Ho, Wo, Cin, KH, KW) so flattened K matches PyTorch weight flattening
    # order (Cout, Cin, KH, KW).reshape(Cout, -1)
    pats = jnp.transpose(pats, (0, 4, 5, 1, 2, 3))
    return pats.reshape(n * ho * wo, cin * KH * KW), (ho, wo)


@functools.partial(
    jax.jit, static_argnames=("activation", "batch_norm", "matmul_dtype", "tile_m"))
def conv_block_forward(x, weight, bias, gamma, beta, *,
                       activation=True, batch_norm=True,
                       matmul_dtype=jnp.float32, tile_m=None):
    """Forward pass of ConvBlock.

    x:      (N, Cin, H, W)  float32 (NCHW, PyTorch layout)
    weight: (Cout, Cin, 4, 4)
    bias:   (Cout,)
    gamma, beta: (Cout,)    BatchNorm2d affine params (training-mode batch stats)
    returns (N, Cout, H//2, W//2) float32
    """
    n, cin, h, w = x.shape
    cout = weight.shape[0]

    patches, (ho, wo) = _im2col(x.astype(jnp.float32))
    m, k = patches.shape

    in_itemsize = jnp.dtype(matmul_dtype).itemsize
    kp = _round_up(k, LANE)
    cp = _round_up(cout, LANE)
    tm = tile_m if tile_m is not None else _choose_tile_m(m, kp, cp, in_itemsize)
    mp = _round_up(m, tm)
    n_tiles = mp // tm

    # Lane-dense, zero-padded operands.  Zero-padded patch rows / K columns /
    # channels contribute exactly zero to the matmul and to the BN statistics
    # (the conv bias is dropped under BN), so padding never changes real outputs.
    patches_p = jnp.pad(patches, ((0, mp - m), (0, kp - k))).astype(matmul_dtype)
    w2d = jnp.pad(weight.reshape(cout, k).T.astype(jnp.float32),
                  ((0, kp - k), (0, cp - cout))).astype(matmul_dtype)
    g2d = jnp.pad(gamma.astype(jnp.float32).reshape(1, cout), ((0, 0), (0, cp - cout)))
    be2d = jnp.pad(beta.astype(jnp.float32).reshape(1, cout), ((0, 0), (0, cp - cout)))
    b2d = jnp.pad(bias.astype(jnp.float32).reshape(1, cout), ((0, 0), (0, cp - cout)))

    tile_spec = pl.BlockSpec((tm, cp), lambda i: (i, 0))
    patch_spec = pl.BlockSpec((tm, kp), lambda i: (i, 0))
    weight_spec = pl.BlockSpec((kp, cp), lambda i: (0, 0))
    chan_spec = pl.BlockSpec((1, cp), lambda i: (0, 0))
    stats_spec = pl.BlockSpec((2, cp), lambda i: (0, 0))
    part_stats_spec = pl.BlockSpec((None, 2, cp), lambda i: (i, 0, 0))

    matmul_cost = pl.CostEstimate(
        flops=2 * mp * kp * cp,
        transcendentals=0,
        bytes_accessed=mp * kp * in_itemsize + kp * cp * in_itemsize + mp * cp * 4)

    if batch_norm:
        # Pass 1: conv matmul + per-tile partial sum / sum-of-squares.  The conv bias
        # is omitted because the BN mean subtraction cancels it exactly.  Grid axis is
        # fully parallel (no carried accumulator) -> megacore-shardable on v7x.
        y2d, stats_part = pl.pallas_call(
            _conv_stats_kernel,
            out_shape=(jax.ShapeDtypeStruct((mp, cp), jnp.float32),
                       jax.ShapeDtypeStruct((n_tiles, 2, cp), jnp.float32)),
            grid=(n_tiles,),
            in_specs=[patch_spec, weight_spec],
            out_specs=[tile_spec, part_stats_spec],
            compiler_params=pltpu.CompilerParams(
                dimension_semantics=("parallel",),
                vmem_limit_bytes=VMEM_LIMIT_BYTES),
            cost_estimate=matmul_cost,
        )(patches_p, w2d)

        # Tiny (n_tiles, 2, Cp) reduction done by XLA; negligible next to the matmul.
        stats = jnp.sum(stats_part, axis=0)  # (2, Cp)

        # Pass 2: normalize + LeakyReLU, in place over the y buffer (aliased),
        # fully parallel over M tiles (megacore-shardable).
        out2d = pl.pallas_call(
            functools.partial(_bn_act_kernel, inv_m=1.0 / m, apply_act=activation),
            out_shape=jax.ShapeDtypeStruct((mp, cp), jnp.float32),
            grid=(n_tiles,),
            in_specs=[tile_spec, stats_spec, chan_spec, chan_spec],
            out_specs=tile_spec,
            input_output_aliases={0: 0},
            compiler_params=pltpu.CompilerParams(
                dimension_semantics=("parallel",),
                vmem_limit_bytes=VMEM_LIMIT_BYTES),
            cost_estimate=pl.CostEstimate(
                flops=4 * mp * cp, transcendentals=cp,
                bytes_accessed=2 * mp * cp * 4),
        )(y2d, stats, g2d, be2d)
    else:
        out2d = pl.pallas_call(
            functools.partial(_conv_bias_act_kernel, apply_act=activation),
            out_shape=jax.ShapeDtypeStruct((mp, cp), jnp.float32),
            grid=(n_tiles,),
            in_specs=[patch_spec, weight_spec, chan_spec],
            out_specs=tile_spec,
            compiler_params=pltpu.CompilerParams(
                dimension_semantics=("parallel",),
                vmem_limit_bytes=VMEM_LIMIT_BYTES),
            cost_estimate=matmul_cost,
        )(patches_p, w2d, b2d)

    # (Mp, Cp) -> strip padding -> (N, Cout, Ho, Wo)
    out = out2d[:m, :cout].reshape(n, ho, wo, cout).transpose(0, 3, 1, 2)
    return out


# ----------------------------------------------------------------------------- reference

def _reference_forward(x, weight, bias, gamma, beta, activation=True, batch_norm=True):
    """Pure-JAX reference mirroring the PyTorch forward (training-mode BN)."""
    y = lax.conv_general_dilated(
        x.astype(jnp.float32), weight.astype(jnp.float32),
        window_strides=(STRIDE, STRIDE),
        padding=((PAD, PAD), (PAD, PAD)),
        dimension_numbers=("NCHW", "OIHW", "NCHW"),
    ) + bias[None, :, None, None]
    if batch_norm:
        mean = y.mean(axis=(0, 2, 3), keepdims=True)
        var = y.var(axis=(0, 2, 3), keepdims=True)
        y = (y - mean) * lax.rsqrt(var + BN_EPS)
        y = y * gamma[None, :, None, None] + beta[None, :, None, None]
    if activation:
        y = jnp.where(y >= 0, y, LRELU_SLOPE * y)
    return y


if __name__ == "__main__":
    # Small shapes consistent with the module: batch=2, in_ch=4, out_ch=8, 16x16 spatial.
    N, CIN, COUT, H, W = 2, 4, 8, 16, 16

    key = jax.random.PRNGKey(0)
    kx, kw_, kb, kg, kbe = jax.random.split(key, 5)
    x = jax.random.normal(kx, (N, CIN, H, W), dtype=jnp.float32)
    weight = jax.random.normal(kw_, (COUT, CIN, KH, KW), dtype=jnp.float32) * 0.1
    bias = jax.random.normal(kb, (COUT,), dtype=jnp.float32) * 0.1
    gamma = 1.0 + 0.1 * jax.random.normal(kg, (COUT,), dtype=jnp.float32)
    beta = 0.1 * jax.random.normal(kbe, (COUT,), dtype=jnp.float32)

    # Default config (BN + LeakyReLU), f32 MXU feed.
    out = jax.block_until_ready(conv_block_forward(x, weight, bias, gamma, beta))
    ref = jax.block_until_ready(_reference_forward(x, weight, bias, gamma, beta))
    assert out.shape == (N, COUT, H // 2, W // 2), out.shape
    np.testing.assert_allclose(np.asarray(out), np.asarray(ref), rtol=1e-4, atol=1e-4)

    # bf16 MXU feed (v6e/v7x fast path); BN/activation math stays in f32.
    out_bf16 = jax.block_until_ready(
        conv_block_forward(x, weight, bias, gamma, beta, matmul_dtype=jnp.bfloat16))
    np.testing.assert_allclose(np.asarray(out_bf16), np.asarray(ref), rtol=5e-2, atol=5e-2)

    # batch_norm / activation flags are honored.
    out_nobn = jax.block_until_ready(
        conv_block_forward(x, weight, bias, gamma, beta, batch_norm=False))
    ref_nobn = _reference_forward(x, weight, bias, gamma, beta, batch_norm=False)
    np.testing.assert_allclose(np.asarray(out_nobn), np.asarray(ref_nobn), rtol=1e-4, atol=1e-4)

    out_noact = jax.block_until_ready(
        conv_block_forward(x, weight, bias, gamma, beta, activation=False))
    ref_noact = _reference_forward(x, weight, bias, gamma, beta, activation=False)
    np.testing.assert_allclose(np.asarray(out_noact), np.asarray(ref_noact), rtol=1e-4, atol=1e-4)

    print("KERNEL_OK")
</pallas_src>

<mosaic_0001>
module attributes {stable_mosaic.version = 11 : i64} {
  func.func @_conv_stats_kernel(%arg0: i32, %arg1: memref<128x128xf32, #tpu.memory_space<vmem>>, %arg2: memref<128x128xf32, #tpu.memory_space<vmem>>, %arg3: memref<128x128xf32, #tpu.memory_space<vmem>>, %arg4: memref<1x2x128xf32, #tpu.memory_space<vmem>>) attributes {dimension_semantics = [#tpu.dimension_semantics<parallel>], iteration_bounds = array<i64: 1>, scalar_prefetch = 0 : i64, scratch_operands = 0 : i64, tpu.core_type = #tpu.core_type<tc>, window_params = [{transform_indices = @transform_0, window_bounds = array<i64: 128, 128>}, {pipeline_mode = #tpu.pipeline_mode<synchronous>, transform_indices = @transform_1, window_bounds = array<i64: 128, 128>}, {transform_indices = @transform_2, window_bounds = array<i64: 128, 128>}, {transform_indices = @transform_3, window_bounds = array<i64: 1, 2, 128>}]} {
    %c0 = arith.constant 0 : index
    %c0_0 = arith.constant 0 : index
    %0 = vector.load %arg1[%c0, %c0_0] : memref<128x128xf32, #tpu.memory_space<vmem>>, vector<128x128xf32>
    %c0_1 = arith.constant 0 : index
    %c0_2 = arith.constant 0 : index
    %1 = vector.load %arg2[%c0_1, %c0_2] : memref<128x128xf32, #tpu.memory_space<vmem>>, vector<128x128xf32>
    %cst = arith.constant dense<0.000000e+00> : vector<128x128xf32>
    %2 = tpu.matmul %0, %1, %cst {dimension_numbers = #tpu.dot_dimension_numbers<[1], [0], [0], [1], [0, 0, 1, 1], [], []>} : vector<128x128xf32>, vector<128x128xf32>, vector<128x128xf32> -> vector<128x128xf32>
    %c0_3 = arith.constant 0 : index
    %c0_4 = arith.constant 0 : index
    %3 = vector.load %arg3[%c0_3, %c0_4] : memref<128x128xf32, #tpu.memory_space<vmem>>, vector<128x128xf32>
    tpu.vector_store %arg3[%c0_3, %c0_4], %2 {strides = array<i32>} : memref<128x128xf32, #tpu.memory_space<vmem>>, vector<128x128xf32>,
    %cst_5 = arith.constant dense<0.000000e+00> : vector<128xf32>
    %4 = vector.multi_reduction <add>, %2, %cst_5 [0] : vector<128x128xf32> to vector<128xf32>
    %5 = vector.shape_cast %4 : vector<128xf32> to vector<1x128xf32>
    %c0_6 = arith.constant 0 : index
    %c0_7 = arith.constant 0 : index
    %c0_8 = arith.constant 0 : index
    %6 = vector.load %arg4[%c0_6, %c0_7, %c0_8] : memref<1x2x128xf32, #tpu.memory_space<vmem>>, vector<1x1x128xf32>
    %7 = vector.shape_cast %6 : vector<1x1x128xf32> to vector<1x128xf32>
    %8 = vector.shape_cast %5 : vector<1x128xf32> to vector<1x1x128xf32>
    tpu.vector_store %arg4[%c0_6, %c0_7, %c0_8], %8 {strides = array<i32>} : memref<1x2x128xf32, #tpu.memory_space<vmem>>, vector<1x1x128xf32>,
    %9 = arith.mulf %2, %2 : vector<128x128xf32>
    %cst_9 = arith.constant dense<0.000000e+00> : vector<128xf32>
    %10 = vector.multi_reduction <add>, %9, %cst_9 [0] : vector<128x128xf32> to vector<128xf32>
    %11 = vector.shape_cast %10 : vector<128xf32> to vector<1x128xf32>
    %c0_10 = arith.constant 0 : index
    %c1 = arith.constant 1 : index
    %c0_11 = arith.constant 0 : index
    %12 = vector.load %arg4[%c0_10, %c1, %c0_11] : memref<1x2x128xf32, #tpu.memory_space<vmem>>, vector<1x1x128xf32>
    %13 = vector.shape_cast %12 : vector<1x1x128xf32> to vector<1x128xf32>
    %14 = vector.shape_cast %11 : vector<1x128xf32> to vector<1x1x128xf32>
    tpu.vector_store %arg4[%c0_10, %c1, %c0_11], %14 {strides = array<i32>} : memref<1x2x128xf32, #tpu.memory_space<vmem>>, vector<1x1x128xf32>,
    return
  }
  func.func @transform_0(%arg0: i32) -> (i32, i32) {
    %c0_i32 = arith.constant 0 : i32
    %c0_i32_0 = arith.constant 0 : i32
    return %arg0, %c0_i32 : i32, i32
  }
  func.func @transform_1(%arg0: i32) -> (i32, i32) {
    %c0_i32 = arith.constant 0 : i32
    %c0_i32_0 = arith.constant 0 : i32
    %c0_i32_1 = arith.constant 0 : i32
    return %c0_i32, %c0_i32_0 : i32, i32
  }
  func.func @transform_2(%arg0: i32) -> (i32, i32) {
    %c0_i32 = arith.constant 0 : i32
    %c0_i32_0 = arith.constant 0 : i32
    return %arg0, %c0_i32 : i32, i32
  }
  func.func @transform_3(%arg0: i32) -> (i32, i32, i32) {
    %c0_i32 = arith.constant 0 : i32
    %c0_i32_0 = arith.constant 0 : i32
    %c0_i32_1 = arith.constant 0 : i32
    return %arg0, %c0_i32, %c0_i32_0 : i32, i32, i32
  }
}

module attributes {stable_mosaic.version = 11 : i64} {
  func.func @_bn_act_kernel(%arg0: i32, %arg1: memref<128x128xf32, #tpu.memory_space<vmem>>, %arg2: memref<2x128xf32, #tpu.memory_space<vmem>>, %arg3: memref<1x128xf32, #tpu.memory_space<vmem>>, %arg4: memref<1x128xf32, #tpu.memory_space<vmem>>, %arg5: memref<128x128xf32, #tpu.memory_space<vmem>>) attributes {dimension_semantics = [#tpu.dimension_semantics<parallel>], iteration_bounds = array<i64: 1>, scalar_prefetch = 0 : i64, scratch_operands = 0 : i64, tpu.core_type = #tpu.core_type<tc>, window_params = [{transform_indices = @transform_0, window_bounds = array<i64: 128, 128>}, {pipeline_mode = #tpu.pipeline_mode<synchronous>, transform_indices = @transform_1, window_bounds = array<i64: 2, 128>}, {pipeline_mode = #tpu.pipeline_mode<synchronous>, transform_indices = @transform_2, window_bounds = array<i64: 1, 128>}, {pipeline_mode = #tpu.pipeline_mode<synchronous>, transform_indices = @transform_3, window_bounds = array<i64: 1, 128>}, {transform_indices = @transform_4, window_bounds = array<i64: 128, 128>}]} {
    %c0 = arith.constant 0 : index
    %c0_0 = arith.constant 0 : index
    %0 = vector.load %arg2[%c0, %c0_0] : memref<2x128xf32, #tpu.memory_space<vmem>>, vector<2x128xf32>
    %1 = vector.extract_strided_slice %0 {offsets = [0, 0], sizes = [1, 128], strides = [1, 1]} : vector<2x128xf32> to vector<1x128xf32>
    %cst = arith.constant 7.812500e-03 : f32
    %2 = vector.broadcast %cst : f32 to vector<1x128xf32>
    %3 = arith.mulf %1, %2 : vector<1x128xf32>
    %4 = vector.extract_strided_slice %0 {offsets = [1, 0], sizes = [1, 128], strides = [1, 1]} : vector<2x128xf32> to vector<1x128xf32>
    %cst_1 = arith.constant 7.812500e-03 : f32
    %5 = vector.broadcast %cst_1 : f32 to vector<1x128xf32>
    %6 = arith.mulf %4, %5 : vector<1x128xf32>
    %7 = arith.mulf %3, %3 : vector<1x128xf32>
    %8 = arith.subf %6, %7 : vector<1x128xf32>
    %cst_2 = arith.constant 0.000000e+00 : f32
    %9 = vector.broadcast %cst_2 : f32 to vector<1x128xf32>
    %10 = arith.maximumf %8, %9 : vector<1x128xf32>
    %c0_3 = arith.constant 0 : index
    %c0_4 = arith.constant 0 : index
    %11 = vector.load %arg3[%c0_3, %c0_4] : memref<1x128xf32, #tpu.memory_space<vmem>>, vector<1x128xf32>
    %cst_5 = arith.constant 9.99999974E-6 : f32
    %12 = vector.broadcast %cst_5 : f32 to vector<1x128xf32>
    %13 = arith.addf %10, %12 : vector<1x128xf32>
    %14 = math.rsqrt %13 : vector<1x128xf32>
    %15 = arith.mulf %11, %14 : vector<1x128xf32>
    %c0_6 = arith.constant 0 : index
    %c0_7 = arith.constant 0 : index
    %16 = vector.load %arg4[%c0_6, %c0_7] : memref<1x128xf32, #tpu.memory_space<vmem>>, vector<1x128xf32>
    %17 = arith.mulf %3, %15 : vector<1x128xf32>
    %18 = arith.subf %16, %17 : vector<1x128xf32>
    %c0_8 = arith.constant 0 : index
    %c0_9 = arith.constant 0 : index
    %19 = vector.load %arg1[%c0_8, %c0_9] : memref<128x128xf32, #tpu.memory_space<vmem>>, vector<128x128xf32>
    %20 = vector.broadcast %15 : vector<1x128xf32> to vector<128x128xf32>
    %21 = arith.mulf %19, %20 : vector<128x128xf32>
    %22 = vector.broadcast %18 : vector<1x128xf32> to vector<128x128xf32>
    %23 = arith.addf %21, %22 : vector<128x128xf32>
    %cst_10 = arith.constant 0.000000e+00 : f32
    %24 = vector.broadcast %cst_10 : f32 to vector<128x128xf32>
    %25 = arith.cmpf oge, %23, %24 : vector<128x128xf32>
    %cst_11 = arith.constant 2.000000e-01 : f32
    %26 = vector.broadcast %cst_11 : f32 to vector<128x128xf32>
    %27 = arith.mulf %26, %23 : vector<128x128xf32>
    %28 = arith.select %25, %23, %27 : vector<128x128xi1>, vector<128x128xf32>
    %c0_12 = arith.constant 0 : index
    %c0_13 = arith.constant 0 : index
    %29 = vector.load %arg5[%c0_12, %c0_13] : memref<128x128xf32, #tpu.memory_space<vmem>>, vector<128x128xf32>
    tpu.vector_store %arg5[%c0_12, %c0_13], %28 {strides = array<i32>} : memref<128x128xf32, #tpu.memory_space<vmem>>, vector<128x128xf32>,
    return
  }
  func.func @transform_0(%arg0: i32) -> (i32, i32) {
    %c0_i32 = arith.constant 0 : i32
    %c0_i32_0 = arith.constant 0 : i32
    return %arg0, %c0_i32 : i32, i32
  }
  func.func @transform_1(%arg0: i32) -> (i32, i32) {
    %c0_i32 = arith.constant 0 : i32
    %c0_i32_0 = arith.constant 0 : i32
    %c0_i32_1 = arith.constant 0 : i32
    return %c0_i32, %c0_i32_0 : i32, i32
  }
  func.func @transform_2(%arg0: i32) -> (i32, i32) {
    %c0_i32 = arith.constant 0 : i32
    %c0_i32_0 = arith.constant 0 : i32
    %c0_i32_1 = arith.constant 0 : i32
    return %c0_i32, %c0_i32_0 : i32, i32
  }
  func.func @transform_3(%arg0: i32) -> (i32, i32) {
    %c0_i32 = arith.constant 0 : i32
    %c0_i32_0 = arith.constant 0 : i32
    %c0_i32_1 = arith.constant 0 : i32
    return %c0_i32, %c0_i32_0 : i32, i32
  }
  func.func @transform_4(%arg0: i32) -> (i32, i32) {
    %c0_i32 = arith.constant 0 : i32
    %c0_i32_0 = arith.constant 0 : i32
    return %arg0, %c0_i32 : i32, i32
  }
}

</mosaic_0001>

<bundles_post_ra>
// kernel: conv_block_forward.2
= control target key start
LH: loop header
LB: loop body
LE: loop exit
PB: predicated region body
PF: predicated region fallthrough
CT: control target
= control target key end

     0   :  { %s564_s1 = inlined_call_operand.vmem [shape: f32[128,128], index: 1, kind: input, shape index: {}]   ;;  %s565_s0 = inlined_call_operand.vmem [shape: f32[128,128], index: 0, kind: input, shape index: {}]   ;;  %s566_s2 = inlined_call_operand.vmem [shape: f32[128,128], index: 2, kind: output, shape index: {0}]   ;;  %s567_s3 = inlined_call_operand.vmem [shape: f32[1,2,128], index: 3, kind: output, shape index: {1}]  }
   0x1   :  { %v44_v0 = vld [vmem:[%s564_s1 + $0x78] sm:$0xff]  ;;  %v43_v1 = vld [vmem:[%s564_s1 + $0x70] sm:$0xff]  ;;  %v42_v2 = vld [vmem:[%s564_s1 + $0x68] sm:$0xff] }
   0x2   :  { %306 = vmatprep.subr.mxu0 %v44_v0  ;;  %362 = vmatprep.subr.mxu1 %v44_v0  ;;  %v41_v3 = vld [vmem:[%s564_s1 + $0x60] sm:$0xff]  ;;  %v40_v4 = vld [vmem:[%s564_s1 + $0x58] sm:$0xff]  ;;  %v39_v5 = vld [vmem:[%s564_s1 + $0x50] sm:$0xff] }
   0x3   :  { %307 = vmatpush3.msra.mxu0 %v44_v0  ;;  %378 = vmatpush3.msra.mxu1 %v44_v0  ;;  %v38_v6 = vld [vmem:[%s564_s1 + $0x48] sm:$0xff]  ;;  %v37_v7 = vld [vmem:[%s564_s1 + $0x40] sm:$0xff]  ;;  %v36_v8 = vld [vmem:[%s564_s1 + $0x38] sm:$0xff] }
   0x4   :  { %308 = vmatprep.subr.mxu0 %v43_v1  ;;  %363 = vmatprep.subr.mxu1 %v43_v1  ;;  %v35_v9 = vld [vmem:[%s564_s1 + $0x30] sm:$0xff]  ;;  %v13_v10 = vld [vmem:[%s565_s0] sm:$0xff]  ;;  %v34_v11 = vld [vmem:[%s564_s1 + $0x28] sm:$0xff] }
   0x5   :  { %309 = vmatpush3.msra.mxu0 %v43_v1  ;;  %379 = vmatpush3.msra.mxu1 %v43_v1  ;;  %v33_v12 = vld [vmem:[%s564_s1 + $0x20] sm:$0xff]  ;;  %v32_v13 = vld [vmem:[%s564_s1 + $0x18] sm:$0xff]  ;;  %v31_v14 = vld [vmem:[%s564_s1 + $0x10] sm:$0xff] }
   0x6   :  { %310 = vmatprep.subr.mxu0 %v42_v2  ;;  %364 = vmatprep.subr.mxu1 %v42_v2  ;;  %v30_v15 = vld [vmem:[%s564_s1 + $0x8] sm:$0xff]  ;;  %v29_v16 = vld [vmem:[%s564_s1] sm:$0xff]  ;;  %v15_v18 = vld [vmem:[%s565_s0 + $0x10] sm:$0xff] }
   0x7   :  { %311 = vmatpush3.msra.mxu0 %v42_v2  ;;  %380 = vmatpush3.msra.mxu1 %v42_v2  ;;  %v14_v17 = vld [vmem:[%s565_s0 + $0x8] sm:$0xff]  ;;  %v21_v19 = vld [vmem:[%s565_s0 + $0x40] sm:$0xff]  ;;  %v23_v21 = vld [vmem:[%s565_s0 + $0x50] sm:$0xff] }
   0x8   :  { %312 = vmatprep.subr.mxu0 %v41_v3  ;;  %365 = vmatprep.subr.mxu1 %v41_v3  ;;  %v22_v20 = vld [vmem:[%s565_s0 + $0x48] sm:$0xff]  ;;  %v16_v22 = vld [vmem:[%s565_s0 + $0x18] sm:$0xff]  ;;  %v17_v23 = vld [vmem:[%s565_s0 + $0x20] sm:$0xff] }
   0x9   :  { %313 = vmatpush3.msra.mxu0 %v41_v3  ;;  %381 = vmatpush3.msra.mxu1 %v41_v3  ;;  %v24_v24 = vld [vmem:[%s565_s0 + $0x58] sm:$0xff]  ;;  %v25_v25 = vld [vmem:[%s565_s0 + $0x60] sm:$0xff]  ;;  %v18_v26 = vld [vmem:[%s565_s0 + $0x28] sm:$0xff] }
   0xa   :  { %314 = vmatprep.subr.mxu0 %v40_v4  ;;  %366 = vmatprep.subr.mxu1 %v40_v4  ;;  %v19_v27 = vld [vmem:[%s565_s0 + $0x30] sm:$0xff]  ;;  %v26_v28 = vld [vmem:[%s565_s0 + $0x68] sm:$0xff]  ;;  %v20_v30 = vld [vmem:[%s565_s0 + $0x38] sm:$0xff] }
   0xb   :  { %315 = vmatpush3.msra.mxu0 %v40_v4  ;;  %382 = vmatpush3.msra.mxu1 %v40_v4  ;;  %v27_v29 = vld [vmem:[%s565_s0 + $0x70] sm:$0xff]  ;;  %v28_v31 = vld [vmem:[%s565_s0 + $0x78] sm:$0xff] }
   0xc   :  { %316 = vmatprep.subr.mxu0 %v39_v5  ;;  %367 = vmatprep.subr.mxu1 %v39_v5 }
   0xd   :  { %317 = vmatpush3.msra.mxu0 %v39_v5  ;;  %383 = vmatpush3.msra.mxu1 %v39_v5 }
   0xe   :  { %318 = vmatprep.subr.mxu0 %v38_v6  ;;  %368 = vmatprep.subr.mxu1 %v38_v6 }
   0xf   :  { %319 = vmatpush3.msra.mxu0 %v38_v6  ;;  %384 = vmatpush3.msra.mxu1 %v38_v6 }
  0x10   :  { %320 = vmatprep.subr.mxu0 %v37_v7  ;;  %369 = vmatprep.subr.mxu1 %v37_v7 }
  0x11   :  { %321 = vmatpush3.msra.mxu0 %v37_v7  ;;  %385 = vmatpush3.msra.mxu1 %v37_v7 }
  0x12   :  { %322 = vmatprep.subr.mxu0 %v36_v8  ;;  %370 = vmatprep.subr.mxu1 %v36_v8 }
  0x13   :  { %323 = vmatpush3.msra.mxu0 %v36_v8  ;;  %386 = vmatpush3.msra.mxu1 %v36_v8 }
  0x14   :  { %324 = vmatprep.subr.mxu0 %v35_v9  ;;  %338 = vmatprep.mubr.f32.mxu0 %v13_v10 }
  0x15   :  { %325 = vmatpush3.msra.mxu0 %v35_v9  ;;  %371 = vmatprep.subr.mxu1 %v35_v9 }
  0x16   :  { %326 = vmatprep.subr.mxu0 %v34_v11  ;;  %387 = vmatpush3.msra.mxu1 %v35_v9 }
  0x17   :  { %327 = vmatpush3.msra.mxu0 %v34_v11  ;;  %372 = vmatprep.subr.mxu1 %v34_v11 }
  0x18   :  { %328 = vmatprep.subr.mxu0 %v33_v12  ;;  %388 = vmatpush3.msra.mxu1 %v34_v11 }
  0x19   :  { %329 = vmatpush3.msra.mxu0 %v33_v12  ;;  %373 = vmatprep.subr.mxu1 %v33_v12 }
  0x1a   :  { %330 = vmatprep.subr.mxu0 %v32_v13  ;;  %389 = vmatpush3.msra.mxu1 %v33_v12 }
  0x1b   :  { %331 = vmatpush3.msra.mxu0 %v32_v13  ;;  %374 = vmatprep.subr.mxu1 %v32_v13 }
  0x1c   :  { %332 = vmatprep.subr.mxu0 %v31_v14  ;;  %390 = vmatpush3.msra.mxu1 %v32_v13 }
  0x1d   :  { %333 = vmatpush3.msra.mxu0 %v31_v14  ;;  %375 = vmatprep.subr.mxu1 %v31_v14 }
  0x1e   :  { %334 = vmatprep.subr.mxu0 %v30_v15  ;;  %391 = vmatpush3.msra.mxu1 %v31_v14 }
  0x1f   :  { %335 = vmatpush3.msra.mxu0 %v30_v15  ;;  %376 = vmatprep.subr.mxu1 %v30_v15 }
  0x20   :  { %336 = vmatprep.subr.mxu0 %v29_v16  ;;  %392 = vmatpush3.msra.mxu1 %v30_v15 }
  0x21   :  { %337 = vmatpush3.msra.mxu0 %v29_v16  ;;  %377 = vmatprep.subr.mxu1 %v29_v16 }
  0x22   :  { %339 = vmatmul.mubr.f32.vlgmr.msra.gmra.mxu0 %v14_v17  ;;  %393 = vmatpush3.msra.mxu1 %v29_v16 }
  0x23   :  { %341 = vmatprep.mubr.f32.mxu0 %v15_v18  ;;  %350 = vmatprep.mubr.f32.mxu1 %v21_v19 }
  0x24   :  { %351 = vmatmul.mubr.f32.vlgmr.msra.gmra.mxu1 %v22_v20 }
  0x25   :  { %353 = vmatprep.mubr.f32.mxu1 %v23_v21 }
  0x26   :  { %342 = vmatmul.mubr.f32.gmra.mxu0 %v16_v22 }
  0x27   :  { %344 = vmatprep.mubr.f32.mxu0 %v17_v23 }
  0x28   :  { %354 = vmatmul.mubr.f32.gmra.mxu1 %v24_v24 }
  0x29   :  { %356 = vmatprep.mubr.f32.mxu1 %v25_v25 }
  0x2a   :  { %345 = vmatmul.mubr.f32.gmra.mxu0 %v18_v26 }
  0x2b   :  { %347 = vmatprep.mubr.f32.mxu0 %v19_v27 }
  0x2c   :  { %357 = vmatmul.mubr.f32.gmra.mxu1 %v26_v28 }
  0x2d   :  { %359 = vmatprep.mubr.f32.mxu1 %v27_v29 }
  0x2e   :  { %348 = vmatmul.mubr.f32.gmra.mxu0 %v20_v30 }
  0x30   :  { %360 = vmatmul.mubr.f32.gmra.mxu1 %v28_v31 }
  0xe2   :  { %v340_v32 = vpop.f32.mrf.mxu0 }
  0xe3   :  { %191 = vst [vmem:[%s566_s2 + $0x8] sm:$0xff] %v340_v32  ;;  %v229_v38 = vmul.f32 %v340_v32, %v340_v32 }
  0xe4   :  { %v111_v33 = vpop.f32.mrf.mxu0  ;;  %v352_v34 = vpop.f32.mrf.mxu1 }
  0xe5   :  { %190 = vst [vmem:[%s566_s2] sm:$0xff] %v111_v33  ;;  %v228_v35 = vmul.f32 %v111_v33, %v111_v33  ;;  %199 = vst [vmem:[%s566_s2 + $0x48] sm:$0xff] %v352_v34  ;;  %v206_v39 = vadd.f32 %v340_v32, %v111_v33  ;;  %v237_v8 = vmul.f32 %v352_v34, %v352_v34 }
  0xe6   :  { %v343_v36 = vpop.f32.mrf.mxu0  ;;  %v151_v37 = vpop.f32.mrf.mxu1 }
  0xe7   :  { %193 = vst [vmem:[%s566_s2 + $0x18] sm:$0xff] %v343_v36  ;;  %198 = vst [vmem:[%s566_s2 + $0x40] sm:$0xff] %v151_v37  ;;  %v244_v42 = vadd.f32 %v229_v38, %v228_v35  ;;  %v231_v47 = vmul.f32 %v343_v36, %v343_v36  ;;  %v236_v7 = vmul.f32 %v151_v37, %v151_v37 }
  0xe8   :  { %v121_v40 = vpop.f32.mrf.mxu0  ;;  %v355_v41 = vpop.f32.mrf.mxu1 }
  0xe9   :  { %192 = vst [vmem:[%s566_s2 + $0x10] sm:$0xff] %v121_v40  ;;  %v207_v43 = vadd.f32 %v206_v39, %v121_v40  ;;  %v230_v44 = vmul.f32 %v121_v40, %v121_v40  ;;  %201 = vst [vmem:[%s566_s2 + $0x58] sm:$0xff] %v355_v41  ;;  %v239_v14 = vmul.f32 %v355_v41, %v355_v41 }
  0xea   :  { %v346_v45 = vpop.f32.mrf.mxu0  ;;  %v161_v46 = vpop.f32.mrf.mxu1 }
  0xeb   :  { %v245_v48 = vadd.f32 %v244_v42, %v230_v44  ;;  %195 = vst [vmem:[%s566_s2 + $0x28] sm:$0xff] %v346_v45  ;;  %v208_v49 = vadd.f32 %v343_v36, %v207_v43  ;;  %200 = vst [vmem:[%s566_s2 + $0x50] sm:$0xff] %v161_v46  ;;  %v233_v57 = vmul.f32 %v346_v45, %v346_v45 }
  0xec   :  { %v131_v50 = vpop.f32.mrf.mxu0  ;;  %v358_v51 = vpop.f32.mrf.mxu1  ;;  %v238_v12 = vmul.f32 %v161_v46, %v161_v46 }
  0xed   :  { %194 = vst [vmem:[%s566_s2 + $0x20] sm:$0xff] %v131_v50  ;;  %v209_v52 = vadd.f32 %v208_v49, %v131_v50  ;;  %v232_v53 = vmul.f32 %v131_v50, %v131_v50  ;;  %v246_v54 = vadd.f32 %v245_v48, %v231_v47  ;;  %203 = vst [vmem:[%s566_s2 + $0x68] sm:$0xff] %v358_v51 }
  0xee   :  { %v349_v55 = vpop.f32.mrf.mxu0  ;;  %v171_v56 = vpop.f32.mrf.mxu1  ;;  %v241_v20 = vmul.f32 %v358_v51, %v358_v51 }
  0xef   :  { %v247_v58 = vadd.f32 %v246_v54, %v232_v53  ;;  %197 = vst [vmem:[%s566_s2 + $0x38] sm:$0xff] %v349_v55  ;;  %v210_v59 = vadd.f32 %v346_v45, %v209_v52  ;;  %202 = vst [vmem:[%s566_s2 + $0x60] sm:$0xff] %v171_v56  ;;  %v235_v2 = vmul.f32 %v349_v55, %v349_v55 }
  0xf0   :  { %v141_v60 = vpop.f32.mrf.mxu0  ;;  %v361_v61 = vpop.f32.mrf.mxu1  ;;  %v240_v18 = vmul.f32 %v171_v56, %v171_v56 }
  0xf1   :  { %196 = vst [vmem:[%s566_s2 + $0x30] sm:$0xff] %v141_v60  ;;  %v211_v62 = vadd.f32 %v210_v59, %v141_v60  ;;  %v234_v63 = vmul.f32 %v141_v60, %v141_v60  ;;  %v248_v0 = vadd.f32 %v247_v58, %v233_v57  ;;  %205 = vst [vmem:[%s566_s2 + $0x78] sm:$0xff] %v361_v61 }
  0xf2   :  { %v181_v1 = vpop.f32.mrf.mxu1  ;;  %v243_v26 = vmul.f32 %v361_v61, %v361_v61 }
  0xf3   :  { %v212_v3 = vadd.f32 %v349_v55, %v211_v62  ;;  %v249_v4 = vadd.f32 %v248_v0, %v234_v63  ;;  %204 = vst [vmem:[%s566_s2 + $0x70] sm:$0xff] %v181_v1  ;;  %v242_v24 = vmul.f32 %v181_v1, %v181_v1 }
  0xf5   :  { %v250_v5 = vadd.f32 %v249_v4, %v235_v2  ;;  %v213_v6 = vadd.f32 %v212_v3, %v151_v37 }
  0xf7   :  { %v251_v9 = vadd.f32 %v250_v5, %v236_v7  ;;  %v214_v10 = vadd.f32 %v352_v34, %v213_v6 }
  0xf9   :  { %v215_v11 = vadd.f32 %v214_v10, %v161_v46  ;;  %v252_v13 = vadd.f32 %v251_v9, %v237_v8 }
  0xfb   :  { %v253_v15 = vadd.f32 %v252_v13, %v238_v12  ;;  %v216_v16 = vadd.f32 %v355_v41, %v215_v11 }
  0xfd   :  { %v217_v17 = vadd.f32 %v216_v16, %v171_v56  ;;  %v254_v19 = vadd.f32 %v253_v15, %v239_v14 }
  0xff   :  { %v255_v21 = vadd.f32 %v254_v19, %v240_v18  ;;  %v218_v22 = vadd.f32 %v358_v51, %v217_v17 }
 0x101   :  { %v219_v23 = vadd.f32 %v218_v22, %v181_v1  ;;  %v256_v25 = vadd.f32 %v255_v21, %v241_v20 }
 0x103   :  { %v220_v27 = vadd.f32 %v361_v61, %v219_v23  ;;  %v257_v28 = vadd.f32 %v256_v25, %v242_v24 }
 0x105   :  { %v221_v29 = vrot.slane %v220_v27, 4  ;;  %v258_v30 = vadd.f32 %v257_v28, %v243_v26 }
 0x107   :  { %v222_v31 = vadd.f32 %v221_v29, %v220_v27  ;;  %v259_v32 = vrot.slane %v258_v30, 4 }
 0x109   :  { %v223_v33 = vrot.slane %v222_v31, 2  ;;  %v260_v34 = vadd.f32 %v259_v32, %v258_v30 }
 0x10b   :  { %v224_v35 = vadd.f32 %v223_v33, %v222_v31  ;;  %v261_v36 = vrot.slane %v260_v34, 2 }
 0x10d   :  { %v225_v37 = vrot.slane %v224_v35, 1  ;;  %v262_v38 = vadd.f32 %v261_v36, %v260_v34 }
 0x10f   :  { %v226_v39 = vadd.f32 %v225_v37, %v224_v35  ;;  %v263_v40 = vrot.slane %v262_v38, 1 }
 0x111   :  { %227 = vst [vmem:[%s567_s3] sm:$0x1] %v226_v39  ;;  %v264_v41 = vadd.f32 %v263_v40, %v262_v38 }
 0x113   :  { %265 = vst [vmem:[%s567_s3 + $0x1] sm:$0x1] %v264_v41 }

// kernel: conv_block_forward.3
= control target key start
LH: loop header
LB: loop body
LE: loop exit
PB: predicated region body
PF: predicated region fallthrough
CT: control target
= control target key end

     0   :  { %v180_v7 = vmov 1966171168   ;;  %v32_v9 = vlaneseq  ;;  %s350_s1 = inlined_call_operand.vmem [shape: f32[2,128], index: 1, kind: input, shape index: {}]   ;;  %s351_s2 = inlined_call_operand.vmem [shape: f32[1,128], index: 2, kind: input, shape index: {}]   ;;  %s352_s0 = inlined_call_operand.vmem [shape: f32[128,128], index: 0, kind: input, shape index: {}, may-alias: {0,4}]   ;;  %s353_s3 = inlined_call_operand.vmem [shape: f32[1,128], index: 3, kind: input, shape index: {}]   ;;  %s354_s4 = inlined_call_operand.vmem [shape: f32[128,128], index: 4, kind: output, shape index: {}, may-alias: {0,4}]  }
   0x1   :  { %v17_v0 = vld [vmem:[%s350_s1] sm:$0x3]  ;;  %v30_v8 = vunpack.c.l.s4 %v180_v7  ;;  %v50_v22 = vld [vmem:[%s352_s0 + $0x8] sm:$0xff]  ;;  %v51_v23 = vld [vmem:[%s352_s0 + $0x10] sm:$0xff] }
   0x2   :  { %v18_v1 = vmul.f32 0.0078125, %v17_v0  ;;  %v33_v11 = vshrl.u32 %v32_v9, 7  ;;  %v25_v16 = vld [vmem:[%s351_s2] sm:$0x1]  ;;  %v52_v24 = vld [vmem:[%s352_s0 + $0x18] sm:$0xff]  ;;  %v54_v28 = vld [vmem:[%s352_s0 + $0x28] sm:$0xff] }
   0x3   :  { %v31_v10 = vunpack.c.0.s8 %v30_v8  ;;  %v46_v20 = vld [vmem:[%s353_s3] sm:$0x1]  ;;  %v55_v29 = vld [vmem:[%s352_s0 + $0x30] sm:$0xff]  ;;  %v56_v30 = vld [vmem:[%s352_s0 + $0x38] sm:$0xff] }
   0x4   :  { %v19_v2 = vmul.f32 %v18_v1, %v18_v1  ;;  %v68_v18 = vsub.s32 0, %v33_v11  ;;  %v49_v21 = vld [vmem:[%s352_s0] sm:$0xff]  ;;  %v58_v32 = vld [vmem:[%s352_s0 + $0x48] sm:$0xff]  ;;  %v59_v33 = vld [vmem:[%s352_s0 + $0x50] sm:$0xff] }
   0x5   :  { %v34_v12 = vsub.s32 %v31_v10, %v33_v11  ;;  %v53_v25 = vld [vmem:[%s352_s0 + $0x20] sm:$0xff]  ;;  %v60_v38 = vld [vmem:[%s352_s0 + $0x58] sm:$0xff]  ;;  %v62_v40 = vld [vmem:[%s352_s0 + $0x68] sm:$0xff] }
   0x6   :  { %v21_v3 = vrot.slane %v19_v2, 7  ;;  %v57_v31 = vld [vmem:[%s352_s0 + $0x40] sm:$0xff] }
   0x7   :  { %v61_v39 = vld [vmem:[%s352_s0 + $0x60] sm:$0xff] }
   0x8   :  { %v23_v4 = vsub.f32 %v18_v1, %v21_v3 }
   0xa   :  { %v24_v5 = vmax.f32 %v23_v4, 0.0 }
   0xc   :  { %v26_v6 = vadd.f32 1e-05, %v24_v5 }
   0xe   :  { %178 = vrsqrt.f32 %v26_v6 }
  0x1b   :  { %v179_v13 = vpop.eup %178 }
  0x1c   :  { %v35_v14 = vrot.slane %v179_v13, %v34_v12 }
  0x1e   :  { %v36_v15 = vcombine.high %v35_v14, %v35_v14 }
  0x20   :  { %v43_v17 = vrot.slane %v36_v15, %v34_v12 }
  0x22   :  { %v45_v19 = vmul.f32 %v43_v17, %v25_v16 }
  0x24   :  { %v47_v26 = vmul.f32 %v45_v19, %v18_v1  ;;  %v230_v27 = vrot.slane %v45_v19, %v68_v18 }
  0x26   :  { %v48_v34 = vsub.f32 %v46_v20, %v47_v26  ;;  %v71_v35 = vmul.f32 %v230_v27, %v49_v21  ;;  %v72_v36 = vmul.f32 %v230_v27, %v50_v22  ;;  %v73_v37 = vmul.f32 %v230_v27, %v51_v23 }
  0x27   :  { %v74_v41 = vmul.f32 %v230_v27, %v52_v24  ;;  %v75_v42 = vmul.f32 %v230_v27, %v53_v25  ;;  %v76_v43 = vmul.f32 %v230_v27, %v54_v28  ;;  %v77_v44 = vmul.f32 %v230_v27, %v55_v29 }
  0x28   :  { %v266_v45 = vrot.slane %v48_v34, %v68_v18  ;;  %v78_v46 = vmul.f32 %v230_v27, %v56_v30  ;;  %v79_v47 = vmul.f32 %v230_v27, %v57_v31  ;;  %v80_v48 = vmul.f32 %v230_v27, %v58_v32 }
  0x29   :  { %v81_v49 = vmul.f32 %v230_v27, %v59_v33  ;;  %v82_v50 = vmul.f32 %v230_v27, %v60_v38  ;;  %v83_v51 = vmul.f32 %v230_v27, %v61_v39  ;;  %v275_v52 = vmul.f32 %v230_v27, %v62_v40 }
  0x2a   :  { %v93_v53 = vadd.f32 %v266_v45, %v71_v35  ;;  %v94_v54 = vadd.f32 %v266_v45, %v72_v36  ;;  %v95_v55 = vadd.f32 %v266_v45, %v73_v37  ;;  %v96_v56 = vadd.f32 %v266_v45, %v74_v41 }
  0x2b   :  { %v97_v57 = vadd.f32 %v266_v45, %v75_v42  ;;  %v98_v58 = vadd.f32 %v266_v45, %v76_v43  ;;  %v99_v59 = vadd.f32 %v266_v45, %v77_v44  ;;  %v100_v60 = vadd.f32 %v266_v45, %v78_v46 }
  0x2c   :  { %vm109_vm0 = vcmp.ge.f32.partialorder %v93_v53, 0.0  ;;  %v125_v61 = vmul.f32 0.2, %v93_v53  ;;  %vm110_vm1 = vcmp.ge.f32.partialorder %v94_v54, 0.0  ;;  %v126_v62 = vmul.f32 0.2, %v94_v54 }
  0x2d   :  { %vm111_vm2 = vcmp.ge.f32.partialorder %v95_v55, 0.0  ;;  %v127_v63 = vmul.f32 0.2, %v95_v55  ;;  %vm112_vm3 = vcmp.ge.f32.partialorder %v96_v56, 0.0  ;;  %v128_v0 = vmul.f32 0.2, %v96_v56 }
  0x2e   :  { %v141_v1 = vsel %vm109_vm0, %v93_v53, %v125_v61  ;;  %v142_v2 = vsel %vm110_vm1, %v94_v54, %v126_v62  ;;  %vm113_vm4 = vcmp.ge.f32.partialorder %v97_v57, 0.0  ;;  %v129_v3 = vmul.f32 0.2, %v97_v57 }
  0x2f   :  { %157 = vst [vmem:[%s354_s4] sm:$0xff] %v141_v1  ;;  %158 = vst [vmem:[%s354_s4 + $0x8] sm:$0xff] %v142_v2  ;;  %v143_v4 = vsel %vm111_vm2, %v95_v55, %v127_v63  ;;  %v144_v5 = vsel %vm112_vm3, %v96_v56, %v128_v0  ;;  %vm114_vm5 = vcmp.ge.f32.partialorder %v98_v58, 0.0  ;;  %v130_v6 = vmul.f32 0.2, %v98_v58 }
  0x30   :  { %159 = vst [vmem:[%s354_s4 + $0x10] sm:$0xff] %v143_v4  ;;  %160 = vst [vmem:[%s354_s4 + $0x18] sm:$0xff] %v144_v5  ;;  %v145_v7 = vsel %vm113_vm4, %v97_v57, %v129_v3  ;;  %vm115_vm6 = vcmp.ge.f32.partialorder %v99_v59, 0.0  ;;  %v131_v8 = vmul.f32 0.2, %v99_v59  ;;  %vm116_vm7 = vcmp.ge.f32.partialorder %v100_v60, 0.0 }
  0x31   :  { %161 = vst [vmem:[%s354_s4 + $0x20] sm:$0xff] %v145_v7  ;;  %v146_v9 = vsel %vm114_vm5, %v98_v58, %v130_v6  ;;  %v132_v10 = vmul.f32 0.2, %v100_v60  ;;  %v101_v11 = vadd.f32 %v266_v45, %v79_v47  ;;  %v102_v12 = vadd.f32 %v266_v45, %v80_v48 }
  0x32   :  { %162 = vst [vmem:[%s354_s4 + $0x28] sm:$0xff] %v146_v9  ;;  %v147_v13 = vsel %vm115_vm6, %v99_v59, %v131_v8  ;;  %v103_v14 = vadd.f32 %v266_v45, %v81_v49  ;;  %v104_v15 = vadd.f32 %v266_v45, %v82_v50  ;;  %v105_v16 = vadd.f32 %v266_v45, %v83_v51 }
  0x33   :  { %163 = vst [vmem:[%s354_s4 + $0x30] sm:$0xff] %v147_v13  ;;  %v148_v17 = vsel %vm116_vm7, %v100_v60, %v132_v10  ;;  %vm117_vm8 = vcmp.ge.f32.partialorder %v101_v11, 0.0  ;;  %v133_v18 = vmul.f32 0.2, %v101_v11  ;;  %vm118_vm9 = vcmp.ge.f32.partialorder %v102_v12, 0.0 }
  0x34   :  { %v134_v21 = vmul.f32 0.2, %v102_v12  ;;  %vm119_vm10 = vcmp.ge.f32.partialorder %v103_v14, 0.0  ;;  %v135_v22 = vmul.f32 0.2, %v103_v14  ;;  %vm120_vm11 = vcmp.ge.f32.partialorder %v104_v15, 0.0 }
  0x35   :  { %v149_v23 = vsel %vm117_vm8, %v101_v11, %v133_v18  ;;  %v136_v24 = vmul.f32 0.2, %v104_v15  ;;  %vm121_vm12 = vcmp.ge.f32.partialorder %v105_v16, 0.0  ;;  %v137_v25 = vmul.f32 0.2, %v105_v16 }
  0x36   :  { %v150_v26 = vsel %vm118_vm9, %v102_v12, %v134_v21  ;;  %v151_v28 = vsel %vm119_vm10, %v103_v14, %v135_v22  ;;  %v106_v29 = vadd.f32 %v266_v45, %v275_v52 }
  0x37   :  { %v152_v31 = vsel %vm120_vm11, %v104_v15, %v136_v24  ;;  %v153_v32 = vsel %vm121_vm12, %v105_v16, %v137_v25 }
  0x38   :  { %vm122_vm13 = vcmp.ge.f32.partialorder %v106_v29, 0.0  ;;  %v138_v34 = vmul.f32 0.2, %v106_v29 }
  0x3a   :  { %v63_v19 = vld [vmem:[%s352_s0 + $0x70] sm:$0xff]  ;;  %v64_v20 = vld [vmem:[%s352_s0 + $0x78] sm:$0xff]  ;;  %v154_v37 = vsel %vm122_vm13, %v106_v29, %v138_v34 }
  0x3b   :  { %164 = vst [vmem:[%s354_s4 + $0x38] sm:$0xff] %v148_v17  ;;  %165 = vst [vmem:[%s354_s4 + $0x40] sm:$0xff] %v149_v23  ;;  %v85_v30 = vmul.f32 %v230_v27, %v63_v19  ;;  %v86_v33 = vmul.f32 %v230_v27, %v64_v20 }
  0x3c   :  { %166 = vst [vmem:[%s354_s4 + $0x48] sm:$0xff] %v150_v26  ;;  %167 = vst [vmem:[%s354_s4 + $0x50] sm:$0xff] %v151_v28 }
  0x3d   :  { %168 = vst [vmem:[%s354_s4 + $0x58] sm:$0xff] %v152_v31  ;;  %169 = vst [vmem:[%s354_s4 + $0x60] sm:$0xff] %v153_v32  ;;  %v107_v35 = vadd.f32 %v266_v45, %v85_v30  ;;  %v108_v36 = vadd.f32 %v266_v45, %v86_v33 }
  0x3e   :  { %170 = vst [vmem:[%s354_s4 + $0x68] sm:$0xff] %v154_v37 }
  0x3f   :  { %vm123_vm14 = vcmp.ge.f32.partialorder %v107_v35, 0.0  ;;  %v139_v38 = vmul.f32 0.2, %v107_v35  ;;  %vm124_vm15 = vcmp.ge.f32.partialorder %v108_v36, 0.0  ;;  %v140_v27 = vmul.f32 0.2, %v108_v36 }
  0x41   :  { %v155_v39 = vsel %vm123_vm14, %v107_v35, %v139_v38  ;;  %v156_v40 = vsel %vm124_vm15, %v108_v36, %v140_v27 }
  0x42   :  { %171 = vst [vmem:[%s354_s4 + $0x70] sm:$0xff] %v155_v39  ;;  %172 = vst [vmem:[%s354_s4 + $0x78] sm:$0xff] %v156_v40 }

</bundles_post_ra>
